<compile_context>
chip_gen: v6e
topology: v6e:2x2x1
jax: 0.10.0
libtpu: 0.0.40
codegen_flags: <defaults>
</compile_context>

<pallas_src>
import jax
import jax.numpy as jnp
from jax.experimental import pallas as pl
from jax.experimental.pallas import tpu as pltpu

_LANES = 128


def _context_gating_kernel(w_ref, b_ref, x_ref, o_ref):
    # w_ref: (C, C) f32 in SMEM (PyTorch Linear weight: [out, in])
    # b_ref: (C,)   f32 in SMEM
    # x_ref/o_ref: (TB, C, TR, 128) tiles in VMEM (pixels dense on sublanes+lanes)
    TB, C = x_ref.shape[0], x_ref.shape[1]
    for bi in range(TB):                                   # static unroll (TB is small)
        # One dense (TR, 128) slab per channel; lane/sublane-dense loads.
        x_c = [x_ref[bi, c].astype(jnp.float32) for c in range(C)]
        for co in range(C):
            # lin[co] = sum_ci W[co, ci] * x[ci] + b[co]   (scalar*slab FMAs on VPU)
            lin = x_c[0] * w_ref[co, 0]
            for ci in range(1, C):
                lin = lin + x_c[ci] * w_ref[co, ci]
            lin = lin + b_ref[co]
            # Gate the RAW input with sigmoid(lin) -- matches the PyTorch module.
            # Direct per-channel store: unmasked, lane-dense vst, no concat temp.
            o_ref[bi, co] = (x_c[co] * jax.nn.sigmoid(lin)).astype(o_ref.dtype)


def _default_vmem_limit():
    """Chip-aware scoped-VMEM limit: ~half physical (32 MiB on v7x, 64 MiB on v5e/v6e)."""
    try:
        cap = pltpu.get_tpu_info().vmem_capacity_bytes
        return max(32 * 1024 * 1024, min(64 * 1024 * 1024, cap // 2))
    except Exception:
        return 32 * 1024 * 1024


def _choose_tiles(B, C, R, itemsize, vmem_limit_bytes):
    """Pick (TB, TR) for blocks of shape (TB, C, TR, 128).

    Accounts for 2x-in + 2x-out double buffers, sublane padding of TR, and f32
    in-kernel temporaries; keeps enough grid steps to pipeline / feed both
    v7x TensorCores while keeping tiles large enough to amortize per-step cost.
    """
    eff = max(int(itemsize), 4)                    # budget in f32 terms (kernel temps)
    budget_per_tile = vmem_limit_bytes // 8        # 4 live buffers + headroom for temps

    bytes_per_row = C * _LANES * eff               # one row-of-128 across all channels

    if R <= 8:
        tr = R                                     # full pixel rows: always legal
    else:
        # largest multiple-of-8 row count that fits the per-tile budget
        tr_budget = max(8, (budget_per_tile // bytes_per_row) // 8 * 8)
        # ~8 steps along the pixel axis so the DMA pipeline has work to hide
        rows_for_8steps = max(8, (R // 8 // 8) * 8)
        # ~2 MiB tiles amortize the ~0.35us per-step overhead
        rows_for_2mib = max(8, ((2 * 1024 * 1024) // bytes_per_row) // 8 * 8)
        tr = min(R, tr_budget, max(rows_for_8steps, rows_for_2mib))

    # Tiny images: batch several samples per grid step so each step moves a
    # meaningful slab, but keep >= 2 batch steps (megacore) and bound the unroll.
    tb = 1
    if tr == R and B > 1:
        tr_pad = ((tr + 7) // 8) * 8
        per_batch = C * tr_pad * _LANES * eff
        if per_batch < (1 << 20):
            tb = min(max(1, B // 2), max(1, budget_per_tile // max(per_batch, 1)), 8)
    return tb, tr


def context_gating_forward(x_nchw, weight, bias):
    """x_nchw: (B, C, H, W). weight: (C, C) [out,in]. bias: (C,). Returns (B, C, H, W)."""
    B, C, H, W = x_nchw.shape
    HW = H * W
    HWp = ((HW + _LANES - 1) // _LANES) * _LANES

    x3 = x_nchw.reshape(B, C, HW)                  # free reshape, stays channel-major
    if HWp != HW:
        x3 = jnp.pad(x3, ((0, 0), (0, 0), (0, HWp - HW)))
    R = HWp // _LANES
    x4 = x3.reshape(B, C, R, _LANES)               # pixels fill sublanes AND lanes

    vmem_limit = _default_vmem_limit()
    tb, tr = _choose_tiles(B, C, R, x_nchw.dtype.itemsize, vmem_limit)
    grid = (pl.cdiv(B, tb), pl.cdiv(R, tr))

    out = pl.pallas_call(
        _context_gating_kernel,
        out_shape=jax.ShapeDtypeStruct((B, C, R, _LANES), x_nchw.dtype),
        grid_spec=pltpu.PrefetchScalarGridSpec(
            num_scalar_prefetch=2,                 # weight + bias -> SMEM, resident
            grid=grid,
            in_specs=[pl.BlockSpec((tb, C, tr, _LANES),
                                   lambda b, p, wr, br: (b, 0, p, 0))],
            out_specs=pl.BlockSpec((tb, C, tr, _LANES),
                                   lambda b, p, wr, br: (b, 0, p, 0)),
        ),
        compiler_params=pltpu.CompilerParams(
            dimension_semantics=("parallel", "parallel"),
            vmem_limit_bytes=vmem_limit,
        ),
    )(weight.astype(jnp.float32), bias.astype(jnp.float32), x4)

    out = out.reshape(B, C, HWp)
    if HWp != HW:
        out = out[:, :, :HW]
    return out.reshape(B, C, H, W)


def context_gating_reference(x_nchw, weight, bias):
    """Pure-JAX reference matching the PyTorch module exactly."""
    x_nhwc = jnp.transpose(x_nchw, (0, 2, 3, 1)).astype(jnp.float32)
    lin = x_nhwc @ weight.astype(jnp.float32).T + bias.astype(jnp.float32)
    lin = jnp.transpose(lin, (0, 3, 1, 2))
    sig = jax.nn.sigmoid(lin)
    return (x_nchw.astype(jnp.float32) * sig).astype(x_nchw.dtype)


if __name__ == "__main__":
    key = jax.random.PRNGKey(0)
    kx, kw, kb, kx2 = jax.random.split(key, 4)

    B, C, H, W = 2, 4, 16, 16   # input_num == C == 4
    x = jax.random.normal(kx, (B, C, H, W), dtype=jnp.float32)

    # Deterministic nn.Linear(C, C)-style init: U(-1/sqrt(C), 1/sqrt(C))
    bound = 1.0 / (C ** 0.5)
    weight = jax.random.uniform(kw, (C, C), minval=-bound, maxval=bound,
                                dtype=jnp.float32)
    bias = jax.random.uniform(kb, (C,), minval=-bound, maxval=bound,
                              dtype=jnp.float32)

    out = context_gating_forward(x, weight, bias)
    out = jax.block_until_ready(out)
    ref = context_gating_reference(x, weight, bias)
    assert out.shape == (B, C, H, W)
    assert jnp.allclose(out, ref, atol=1e-5, rtol=1e-5), "mismatch vs reference"

    # Also exercise the HW-not-multiple-of-128 padding path (review concern).
    x2 = jax.random.normal(kx2, (B, C, 10, 10), dtype=jnp.float32)
    out2 = jax.block_until_ready(context_gating_forward(x2, weight, bias))
    ref2 = context_gating_reference(x2, weight, bias)
    assert jnp.allclose(out2, ref2, atol=1e-5, rtol=1e-5), "mismatch (padded HW)"

    print("KERNEL_OK")
</pallas_src>

<mosaic_0001>
module attributes {stable_mosaic.version = 11 : i64} {
  func.func @_context_gating_kernel(%arg0: i32, %arg1: i32, %arg2: memref<4x4xf32, #tpu.memory_space<smem>>, %arg3: memref<4xf32, #tpu.memory_space<smem>>, %arg4: memref<1x4x2x128xf32, #tpu.memory_space<vmem>>, %arg5: memref<1x4x2x128xf32, #tpu.memory_space<vmem>>) attributes {dimension_semantics = [#tpu.dimension_semantics<parallel>, #tpu.dimension_semantics<parallel>], iteration_bounds = array<i64: 2, 1>, scalar_prefetch = 2 : i64, scratch_operands = 0 : i64, tpu.core_type = #tpu.core_type<tc>, window_params = [{transform_indices = @transform_0, window_bounds = array<i64: 1, 4, 2, 128>}, {transform_indices = @transform_1, window_bounds = array<i64: 1, 4, 2, 128>}]} {
    %c0 = arith.constant 0 : index
    %c0_0 = arith.constant 0 : index
    %c0_1 = arith.constant 0 : index
    %c0_2 = arith.constant 0 : index
    %0 = vector.load %arg4[%c0, %c0_0, %c0_1, %c0_2] : memref<1x4x2x128xf32, #tpu.memory_space<vmem>>, vector<1x1x2x128xf32>
    %1 = vector.shape_cast %0 : vector<1x1x2x128xf32> to vector<2x128xf32>
    %c0_3 = arith.constant 0 : index
    %c1 = arith.constant 1 : index
    %c0_4 = arith.constant 0 : index
    %c0_5 = arith.constant 0 : index
    %2 = vector.load %arg4[%c0_3, %c1, %c0_4, %c0_5] : memref<1x4x2x128xf32, #tpu.memory_space<vmem>>, vector<1x1x2x128xf32>
    %3 = vector.shape_cast %2 : vector<1x1x2x128xf32> to vector<2x128xf32>
    %c0_6 = arith.constant 0 : index
    %c2 = arith.constant 2 : index
    %c0_7 = arith.constant 0 : index
    %c0_8 = arith.constant 0 : index
    %4 = vector.load %arg4[%c0_6, %c2, %c0_7, %c0_8] : memref<1x4x2x128xf32, #tpu.memory_space<vmem>>, vector<1x1x2x128xf32>
    %5 = vector.shape_cast %4 : vector<1x1x2x128xf32> to vector<2x128xf32>
    %c0_9 = arith.constant 0 : index
    %c3 = arith.constant 3 : index
    %c0_10 = arith.constant 0 : index
    %c0_11 = arith.constant 0 : index
    %6 = vector.load %arg4[%c0_9, %c3, %c0_10, %c0_11] : memref<1x4x2x128xf32, #tpu.memory_space<vmem>>, vector<1x1x2x128xf32>
    %7 = vector.shape_cast %6 : vector<1x1x2x128xf32> to vector<2x128xf32>
    %c0_12 = arith.constant 0 : index
    %c0_13 = arith.constant 0 : index
    %8 = memref.load %arg2[%c0_12, %c0_13] : memref<4x4xf32, #tpu.memory_space<smem>>
    %9 = vector.broadcast %8 : f32 to vector<2x128xf32>
    %10 = arith.mulf %1, %9 : vector<2x128xf32>
    %c0_14 = arith.constant 0 : index
    %c1_15 = arith.constant 1 : index
    %11 = memref.load %arg2[%c0_14, %c1_15] : memref<4x4xf32, #tpu.memory_space<smem>>
    %12 = vector.broadcast %11 : f32 to vector<2x128xf32>
    %13 = arith.mulf %3, %12 : vector<2x128xf32>
    %14 = arith.addf %10, %13 : vector<2x128xf32>
    %c0_16 = arith.constant 0 : index
    %c2_17 = arith.constant 2 : index
    %15 = memref.load %arg2[%c0_16, %c2_17] : memref<4x4xf32, #tpu.memory_space<smem>>
    %16 = vector.broadcast %15 : f32 to vector<2x128xf32>
    %17 = arith.mulf %5, %16 : vector<2x128xf32>
    %18 = arith.addf %14, %17 : vector<2x128xf32>
    %c0_18 = arith.constant 0 : index
    %c3_19 = arith.constant 3 : index
    %19 = memref.load %arg2[%c0_18, %c3_19] : memref<4x4xf32, #tpu.memory_space<smem>>
    %20 = vector.broadcast %19 : f32 to vector<2x128xf32>
    %21 = arith.mulf %7, %20 : vector<2x128xf32>
    %22 = arith.addf %18, %21 : vector<2x128xf32>
    %c0_20 = arith.constant 0 : index
    %23 = memref.load %arg3[%c0_20] : memref<4xf32, #tpu.memory_space<smem>>
    %24 = vector.broadcast %23 : f32 to vector<2x128xf32>
    %25 = arith.addf %22, %24 : vector<2x128xf32>
    %26 = arith.negf %25 : vector<2x128xf32>
    %27 = math.exp %26 : vector<2x128xf32>
    %cst = arith.constant 1.000000e+00 : f32
    %28 = vector.broadcast %cst : f32 to vector<2x128xf32>
    %29 = arith.addf %28, %27 : vector<2x128xf32>
    %30 = arith.divf %28, %29 : vector<2x128xf32>
    %31 = arith.mulf %1, %30 : vector<2x128xf32>
    %c0_21 = arith.constant 0 : index
    %c0_22 = arith.constant 0 : index
    %c0_23 = arith.constant 0 : index
    %c0_24 = arith.constant 0 : index
    %32 = vector.load %arg5[%c0_21, %c0_22, %c0_23, %c0_24] : memref<1x4x2x128xf32, #tpu.memory_space<vmem>>, vector<1x1x2x128xf32>
    %33 = vector.shape_cast %32 : vector<1x1x2x128xf32> to vector<2x128xf32>
    %34 = vector.shape_cast %31 : vector<2x128xf32> to vector<1x1x2x128xf32>
    tpu.vector_store %arg5[%c0_21, %c0_22, %c0_23, %c0_24], %34 {strides = array<i32>} : memref<1x4x2x128xf32, #tpu.memory_space<vmem>>, vector<1x1x2x128xf32>,
    %c1_25 = arith.constant 1 : index
    %c0_26 = arith.constant 0 : index
    %35 = memref.load %arg2[%c1_25, %c0_26] : memref<4x4xf32, #tpu.memory_space<smem>>
    %36 = vector.broadcast %35 : f32 to vector<2x128xf32>
    %37 = arith.mulf %1, %36 : vector<2x128xf32>
    %c1_27 = arith.constant 1 : index
    %c1_28 = arith.constant 1 : index
    %38 = memref.load %arg2[%c1_27, %c1_28] : memref<4x4xf32, #tpu.memory_space<smem>>
    %39 = vector.broadcast %38 : f32 to vector<2x128xf32>
    %40 = arith.mulf %3, %39 : vector<2x128xf32>
    %41 = arith.addf %37, %40 : vector<2x128xf32>
    %c1_29 = arith.constant 1 : index
    %c2_30 = arith.constant 2 : index
    %42 = memref.load %arg2[%c1_29, %c2_30] : memref<4x4xf32, #tpu.memory_space<smem>>
    %43 = vector.broadcast %42 : f32 to vector<2x128xf32>
    %44 = arith.mulf %5, %43 : vector<2x128xf32>
    %45 = arith.addf %41, %44 : vector<2x128xf32>
    %c1_31 = arith.constant 1 : index
    %c3_32 = arith.constant 3 : index
    %46 = memref.load %arg2[%c1_31, %c3_32] : memref<4x4xf32, #tpu.memory_space<smem>>
    %47 = vector.broadcast %46 : f32 to vector<2x128xf32>
    %48 = arith.mulf %7, %47 : vector<2x128xf32>
    %49 = arith.addf %45, %48 : vector<2x128xf32>
    %c1_33 = arith.constant 1 : index
    %50 = memref.load %arg3[%c1_33] : memref<4xf32, #tpu.memory_space<smem>>
    %51 = vector.broadcast %50 : f32 to vector<2x128xf32>
    %52 = arith.addf %49, %51 : vector<2x128xf32>
    %53 = arith.negf %52 : vector<2x128xf32>
    %54 = math.exp %53 : vector<2x128xf32>
    %cst_34 = arith.constant 1.000000e+00 : f32
    %55 = vector.broadcast %cst_34 : f32 to vector<2x128xf32>
    %56 = arith.addf %55, %54 : vector<2x128xf32>
    %57 = arith.divf %55, %56 : vector<2x128xf32>
    %58 = arith.mulf %3, %57 : vector<2x128xf32>
    %c0_35 = arith.constant 0 : index
    %c1_36 = arith.constant 1 : index
    %c0_37 = arith.constant 0 : index
    %c0_38 = arith.constant 0 : index
    %59 = vector.load %arg5[%c0_35, %c1_36, %c0_37, %c0_38] : memref<1x4x2x128xf32, #tpu.memory_space<vmem>>, vector<1x1x2x128xf32>
    %60 = vector.shape_cast %59 : vector<1x1x2x128xf32> to vector<2x128xf32>
    %61 = vector.shape_cast %58 : vector<2x128xf32> to vector<1x1x2x128xf32>
    tpu.vector_store %arg5[%c0_35, %c1_36, %c0_37, %c0_38], %61 {strides = array<i32>} : memref<1x4x2x128xf32, #tpu.memory_space<vmem>>, vector<1x1x2x128xf32>,
    %c2_39 = arith.constant 2 : index
    %c0_40 = arith.constant 0 : index
    %62 = memref.load %arg2[%c2_39, %c0_40] : memref<4x4xf32, #tpu.memory_space<smem>>
    %63 = vector.broadcast %62 : f32 to vector<2x128xf32>
    %64 = arith.mulf %1, %63 : vector<2x128xf32>
    %c2_41 = arith.constant 2 : index
    %c1_42 = arith.constant 1 : index
    %65 = memref.load %arg2[%c2_41, %c1_42] : memref<4x4xf32, #tpu.memory_space<smem>>
    %66 = vector.broadcast %65 : f32 to vector<2x128xf32>
    %67 = arith.mulf %3, %66 : vector<2x128xf32>
    %68 = arith.addf %64, %67 : vector<2x128xf32>
    %c2_43 = arith.constant 2 : index
    %c2_44 = arith.constant 2 : index
    %69 = memref.load %arg2[%c2_43, %c2_44] : memref<4x4xf32, #tpu.memory_space<smem>>
    %70 = vector.broadcast %69 : f32 to vector<2x128xf32>
    %71 = arith.mulf %5, %70 : vector<2x128xf32>
    %72 = arith.addf %68, %71 : vector<2x128xf32>
    %c2_45 = arith.constant 2 : index
    %c3_46 = arith.constant 3 : index
    %73 = memref.load %arg2[%c2_45, %c3_46] : memref<4x4xf32, #tpu.memory_space<smem>>
    %74 = vector.broadcast %73 : f32 to vector<2x128xf32>
    %75 = arith.mulf %7, %74 : vector<2x128xf32>
    %76 = arith.addf %72, %75 : vector<2x128xf32>
    %c2_47 = arith.constant 2 : index
    %77 = memref.load %arg3[%c2_47] : memref<4xf32, #tpu.memory_space<smem>>
    %78 = vector.broadcast %77 : f32 to vector<2x128xf32>
    %79 = arith.addf %76, %78 : vector<2x128xf32>
    %80 = arith.negf %79 : vector<2x128xf32>
    %81 = math.exp %80 : vector<2x128xf32>
    %cst_48 = arith.constant 1.000000e+00 : f32
    %82 = vector.broadcast %cst_48 : f32 to vector<2x128xf32>
    %83 = arith.addf %82, %81 : vector<2x128xf32>
    %84 = arith.divf %82, %83 : vector<2x128xf32>
    %85 = arith.mulf %5, %84 : vector<2x128xf32>
    %c0_49 = arith.constant 0 : index
    %c2_50 = arith.constant 2 : index
    %c0_51 = arith.constant 0 : index
    %c0_52 = arith.constant 0 : index
    %86 = vector.load %arg5[%c0_49, %c2_50, %c0_51, %c0_52] : memref<1x4x2x128xf32, #tpu.memory_space<vmem>>, vector<1x1x2x128xf32>
    %87 = vector.shape_cast %86 : vector<1x1x2x128xf32> to vector<2x128xf32>
    %88 = vector.shape_cast %85 : vector<2x128xf32> to vector<1x1x2x128xf32>
    tpu.vector_store %arg5[%c0_49, %c2_50, %c0_51, %c0_52], %88 {strides = array<i32>} : memref<1x4x2x128xf32, #tpu.memory_space<vmem>>, vector<1x1x2x128xf32>,
    %c3_53 = arith.constant 3 : index
    %c0_54 = arith.constant 0 : index
    %89 = memref.load %arg2[%c3_53, %c0_54] : memref<4x4xf32, #tpu.memory_space<smem>>
    %90 = vector.broadcast %89 : f32 to vector<2x128xf32>
    %91 = arith.mulf %1, %90 : vector<2x128xf32>
    %c3_55 = arith.constant 3 : index
    %c1_56 = arith.constant 1 : index
    %92 = memref.load %arg2[%c3_55, %c1_56] : memref<4x4xf32, #tpu.memory_space<smem>>
    %93 = vector.broadcast %92 : f32 to vector<2x128xf32>
    %94 = arith.mulf %3, %93 : vector<2x128xf32>
    %95 = arith.addf %91, %94 : vector<2x128xf32>
    %c3_57 = arith.constant 3 : index
    %c2_58 = arith.constant 2 : index
    %96 = memref.load %arg2[%c3_57, %c2_58] : memref<4x4xf32, #tpu.memory_space<smem>>
    %97 = vector.broadcast %96 : f32 to vector<2x128xf32>
    %98 = arith.mulf %5, %97 : vector<2x128xf32>
    %99 = arith.addf %95, %98 : vector<2x128xf32>
    %c3_59 = arith.constant 3 : index
    %c3_60 = arith.constant 3 : index
    %100 = memref.load %arg2[%c3_59, %c3_60] : memref<4x4xf32, #tpu.memory_space<smem>>
    %101 = vector.broadcast %100 : f32 to vector<2x128xf32>
    %102 = arith.mulf %7, %101 : vector<2x128xf32>
    %103 = arith.addf %99, %102 : vector<2x128xf32>
    %c3_61 = arith.constant 3 : index
    %104 = memref.load %arg3[%c3_61] : memref<4xf32, #tpu.memory_space<smem>>
    %105 = vector.broadcast %104 : f32 to vector<2x128xf32>
    %106 = arith.addf %103, %105 : vector<2x128xf32>
    %107 = arith.negf %106 : vector<2x128xf32>
    %108 = math.exp %107 : vector<2x128xf32>
    %cst_62 = arith.constant 1.000000e+00 : f32
    %109 = vector.broadcast %cst_62 : f32 to vector<2x128xf32>
    %110 = arith.addf %109, %108 : vector<2x128xf32>
    %111 = arith.divf %109, %110 : vector<2x128xf32>
    %112 = arith.mulf %7, %111 : vector<2x128xf32>
    %c0_63 = arith.constant 0 : index
    %c3_64 = arith.constant 3 : index
    %c0_65 = arith.constant 0 : index
    %c0_66 = arith.constant 0 : index
    %113 = vector.load %arg5[%c0_63, %c3_64, %c0_65, %c0_66] : memref<1x4x2x128xf32, #tpu.memory_space<vmem>>, vector<1x1x2x128xf32>
    %114 = vector.shape_cast %113 : vector<1x1x2x128xf32> to vector<2x128xf32>
    %115 = vector.shape_cast %112 : vector<2x128xf32> to vector<1x1x2x128xf32>
    tpu.vector_store %arg5[%c0_63, %c3_64, %c0_65, %c0_66], %115 {strides = array<i32>} : memref<1x4x2x128xf32, #tpu.memory_space<vmem>>, vector<1x1x2x128xf32>,
    return
  }
  func.func @transform_0(%arg0: i32, %arg1: i32, %arg2: memref<4x4xf32, #tpu.memory_space<smem>>, %arg3: memref<4xf32, #tpu.memory_space<smem>>) -> (i32, i32, i32, i32) {
    %c0_i32 = arith.constant 0 : i32
    %c0_i32_0 = arith.constant 0 : i32
    %c0_i32_1 = arith.constant 0 : i32
    return %arg0, %c0_i32, %arg1, %c0_i32_0 : i32, i32, i32, i32
  }
  func.func @transform_1(%arg0: i32, %arg1: i32, %arg2: memref<4x4xf32, #tpu.memory_space<smem>>, %arg3: memref<4xf32, #tpu.memory_space<smem>>) -> (i32, i32, i32, i32) {
    %c0_i32 = arith.constant 0 : i32
    %c0_i32_0 = arith.constant 0 : i32
    %c0_i32_1 = arith.constant 0 : i32
    return %arg0, %c0_i32, %arg1, %c0_i32_0 : i32, i32, i32, i32
  }
}

</mosaic_0001>

<bundles_post_ra>
// kernel: tpu_custom_call.1
= control target key start
LH: loop header
LB: loop body
LE: loop exit
PB: predicated region body
PF: predicated region fallthrough
CT: control target
= control target key end

     0   :  { %s637_s12 = smov [#allocation3]   ;;  %s852_s0 = inlined_call_operand.hbm [shape: f32[4,4], index: 0, kind: input, shape index: {}]   ;;  %s853_s2 = inlined_call_operand.hbm [shape: f32[2,4,2,128], index: 2, kind: input, shape index: {}]   ;;  %s854_s3 = inlined_call_operand.hbm [shape: f32[2,4,2,128], index: 3, kind: output, shape index: {}]   ;;  %s855_s1 = inlined_call_operand.vmem [shape: f32[4], index: 1, kind: input, shape index: {}]  }
   0x1   :  { %9 = dma.hbm_to_smem %s852_s0, 64, %s637_s12, [#allocation2] }
   0x2   :  { %s10_s17 = sshll.u32 %s855_s1, 4  ;;  %s11_s17 = int_to_ptr.vmem [resolvable:$true] %s10_s17 }
   0x3   :  { %s513_s18 = scalar_lea.vmem %s11_s17, 16  ;;  %p518_p1 = scmp.lt.s32.totalorder %s11_s17, %s11_s17 }
   0x4   :  { %p514_p0 = scmp.ne.s32.totalorder %s11_s17, %s513_s18  ;;  %p519_p2 = scmp.lt.s32.totalorder %s513_s18, %s513_s18 }
   0x6   :  { %p520_p3 = por %p519_p2, %p518_p1 }
   0x8   :  { %p521_p4 = pnand %p520_p3, %p514_p0 }
   0xa   :  { %524 = shalt.err (!%p521_p4)  }
   0xb   :  { %s638_s19 = smov [#allocation4]  }
   0xc   :  { %13 = dma.vmem_to_smem %s11_s17, 16, %s638_s19, [#allocation2] }
   0xd   :  { %603 = dma.done.wait [#allocation2], 80 }
   0xe   :  { %604 = vsyncadd [#allocation2], 4294967216 }
   0xf   :  { %15 = sfence }
  0x10   :  { %16 = vsyncpa [#allocation6], 0 }
  0x11   :  { %18 = vsyncpa [#allocation6 + $0x1], 0 }
  0x12   :  { %19 = vsyncpa [#allocation7], 0 }
  0x13   :  { %21 = vsyncpa [#allocation7 + $0x1], 0  ;;  %s671_s0 = smov 0   ;;  %s673_s1 = smov 0  }
  0x14   :  { %s675_s20 = smov 0   ;;  %s677_s21 = smov 0  }
  0x15   :  { %s679_s22 = smov 0   ;;  %s681_s23 = smov 0  }
  0x16 LB: > { %s376_s24 = sadd.s32 4294967295, %s635_s23   ;;  %s377_s25 = sadd.s32 4294967294, %s635_s23   ;;  %s635_s23 = sphi %s681_s23, %s27_s23   ;;  %s631_s22 = sphi %s679_s22, %s866_s22   ;;  %s627_s21 = sphi %s677_s21, %s865_s21   ;;  %s623_s20 = sphi %s675_s20, %s864_s20   ;;  %s619_s1 = sphi %s673_s1, %s863_s1   ;;  %s615_s0 = sphi %s671_s0, %s862_s0  }
  0x17   : > { %s39_s26 = sadd.s32 1, %s631_s22  ;;  %s48_s27 = sadd.s32 1, %s623_s20 }
  0x18   : > { %p41_p5 = scmp.ge.s32.totalorder %s39_s26, 2  ;;  %p55_p6 = scmp.ne.s32.totalorder %s623_s20, %s619_s1 }
  0x19   : > { %p56_p7 = scmp.eq.s32.totalorder %s635_s23, 0  ;;  %p61_p8 = scmp.ne.s32.totalorder %s619_s1, %s615_s0 }
  0x1a   : > { %s868_s26 = smov (%p41_p5, %s39_s26), 0  ;;  %p62_p10 = scmp.eq.s32.totalorder %s376_s24, 0 }
  0x1b   : > { %p712_p9 = por %p56_p7, %p55_p6  ;;  %s43_s29 = ssub.s32 %s631_s22, %s868_s26 }
  0x1c   : > { %p87_p11 = scmp.eq.s32.totalorder %s376_s24, 1  ;;  %p46_p12 = scmp.eq.s32.totalorder %s43_s29, 0 }
  0x1d   : > { %p718_p13 = por %p62_p10, %p61_p8  ;;  %p93_p1 = scmp.eq.s32.totalorder %s377_s25, 1 }
  0x1e   : > { %p722_p0 = por %p87_p11, %p55_p6  ;;  %p433_p4 = scmp.lt.s32.totalorder %s635_s23, 2 }
  0x1f   : > { %s727_s5 = scalar_select %p46_p12, %s623_s20, %s48_s27  }
  0x20   : > { %p729_p2 = por %p93_p1, %p61_p8  ;;  %s113_s7 = sand.u32 1, %s623_s20  }
  0x21   : > { %s380_s8 = sshll.u32 %s113_s7, 3  ;;  %s419_s9 = sshll.u32 %s631_s22, 7 }
  0x22   : > { %s124_s12 = scalar_lea.hbm %s853_s2, %s419_s9  ;;  %s117_s13 = scalar_lea.vmem [#allocation5], %s380_s8 }
  0x23   : > { %s125_s14 = sshll.u32 %s117_s13, 4  ;;  %p742_p5 = pnand %p433_p4, %p712_p9  ;;  %s126_s14 = int_to_ptr.vmem [resolvable:$true] %s125_s14 }
  0x24   : > { %p383_p6 = scmp.ge.s32.totalorder %s635_s23, 1  ;;  %s114_s16 = scalar_lea.sflag [#allocation6], %s113_s7 }
  0x25   : > { %p527_p7 = pneg %p742_p5  ;;  %s538_s17 = scalar_lea.vmem %s126_s14, 128 }
  0x26   : > { %p539_p8 = scmp.ne.s32.totalorder %s126_s14, %s538_s17  ;;  %s639_s18 = smov [#allocation5]  }
  0x27   : > { %s543_s19 = sshll.u32 %s639_s18, 4  ;;  %s544_s19 = int_to_ptr.vmem [resolvable:$false] %s543_s19 }
  0x28   : > { %p541_p10 = pnand %p539_p8, %p527_p7  ;;  %s545_s24 = scalar_lea.vmem %s544_s19, 256 }
  0x29   : > { %p546_p12 = scmp.lt.s32.totalorder %s126_s14, %s544_s19  ;;  %p547_p1 = scmp.lt.s32.totalorder %s545_s24, %s538_s17 }
  0x2a   : > { %p542_p11 = pneg %p541_p10 }
  0x2b   : > { %p548_p3 = por %p547_p1, %p546_p12 }
  0x2d   : > { %p549_p9 = pnand %p548_p3, %p542_p11 }
  0x2f   : > { %552 = shalt.err (!%p549_p9)
}
  0x30   : > { %s640_s25 = smov 32   ;;  %s641_s27 = smov 2  }
  0x31   : > { %428 = dma.hbm_to_vmem [thread:$0]  (!%p742_p5), %s124_s12, 128, %s126_s14, %s114_s16, %s640_s25, %s640_s25, %s641_s27  }
  0x32   : > { %p133_p4 = scmp.lt.s32.totalorder %s635_s23, 3 }
  0x34   : > { %p134_p7 = pnand %p383_p6, %p133_p4 }
  0x35   : > { %s755_s28 = sand.u32 (!%p134_p7), 1, %s619_s1  }
  0x36   : > { %137 = sbr.rel (%p134_p7) target bundleno = 139 (0x8b), region = 24  ;;  %s384_s29 = sshll.u32 (!%p134_p7), %s755_s28, 3 }
  0x37   : > { %s140_s7 = scalar_lea.sflag (!%p134_p7), [#allocation6], %s755_s28  ;;  %s143_s8 = scalar_lea.vmem (!%p134_p7), [#allocation5], %s384_s29 }
  0x3b   : > { %606 = dma.done.wait (%p718_p13), %s140_s7, 128  }
  0x3c   : > { %608 = vsyncadd (%p718_p13), %s140_s7, 4294967168  ;;  %s169_s9 = sld [smem:[#allocation3]]  ;;  %v767_v0 = vld [vmem:[%s143_s8] sm:$0x3]  ;;  %v769_v1 = vld [vmem:[%s143_s8 + $0x2] sm:$0x3] }
  0x3d   : > { %s389_s10 = sld [smem:[#allocation3 + $0x1]]  ;;  %v771_v2 = vld [vmem:[%s143_s8 + $0x4] sm:$0x3]  ;;  %v773_v4 = vld [vmem:[%s143_s8 + $0x6] sm:$0x3] }
  0x3e   : > { %s390_s11 = sld [smem:[#allocation3 + $0x2]] }
  0x3f   : > { %s391_s12 = sld [smem:[#allocation3 + $0x3]] }
  0x40   : > { %s765_s13 = sld [smem:[#allocation4]] }
  0x41   : > { %s393_s14 = sld [smem:[#allocation3 + $0x80]] }
  0x42   : > { %v170_v3 = vstv %s169_s9  ;;  %s394_s30 = sld [smem:[#allocation3 + $0x81]] }
  0x43   : > { %v171_v5 = vmul.f32 %v170_v3, %v767_v0  ;;  %v173_v6 = vstv %s389_s10  ;;  %s395_s15 = sld [smem:[#allocation3 + $0x82]] }
  0x44   : > { %v174_v7 = vmul.f32 %v769_v1, %v173_v6  ;;  %v177_v8 = vstv %s390_s11  ;;  %s396_s16 = sld [smem:[#allocation3 + $0x83]] }
  0x45   : > { %v178_v9 = vmul.f32 %v771_v2, %v177_v8  ;;  %v181_v10 = vstv %s391_s12  ;;  %s400_s17 = sld [smem:[#allocation3 + $0x100]]  ;;  %s161_s12 = scalar_lea.vmem [#allocation8], %s384_s29 }
  0x46   : > { %v175_v11 = vadd.f32 %v174_v7, %v171_v5  ;;  %v182_v12 = vmul.f32 %v773_v4, %v181_v10  ;;  %s401_s18 = sld [smem:[#allocation3 + $0x101]]  ;;  %v185_v16 = vstv %s765_s13  ;;  %s291_s13 = sshll.u32 %s161_s12, 4  ;;  %s798_s13 = int_to_ptr.vmem [resolvable:$true] %s291_s13 }
  0x47   : > { %v196_v13 = vstv %s393_s14  ;;  %s402_s19 = sld [smem:[#allocation3 + $0x102]]  ;;  %s420_s14 = sshll.u32 %s627_s21, 7 }
  0x48   : > { %v179_v14 = vadd.f32 %v178_v9, %v175_v11  ;;  %v197_v15 = vmul.f32 %v196_v13, %v767_v0  ;;  %v199_v17 = vstv %s394_s30  ;;  %s403_s24 = sld [smem:[#allocation3 + $0x103]]  ;;  %s803_s29 = scalar_lea.hbm %s854_s3, %s420_s14 }
  0x49   : > { %v200_v19 = vmul.f32 %v769_v1, %v199_v17  ;;  %v203_v20 = vstv %s395_s15  ;;  %s407_s25 = sld [smem:[#allocation3 + $0x180]]  ;;  %s642_s21 = smov [#allocation8]  }
  0x4a   : > { %v183_v18 = vadd.f32 %v182_v12, %v179_v14  ;;  %v204_v21 = vmul.f32 %v771_v2, %v203_v20  ;;  %v207_v22 = vstv %s396_s16  ;;  %s408_s27 = sld [smem:[#allocation3 + $0x181]]  ;;  %s277_s16 = scalar_lea.sflag [#allocation7], %s755_s28 }
  0x4b   : > { %v201_v24 = vadd.f32 %v200_v19, %v197_v15  ;;  %v223_v25 = vstv %s400_s17  ;;  %s409_s7 = sld [smem:[#allocation3 + $0x182]]  ;;  %v208_v26 = vmul.f32 %v773_v4, %v207_v22  ;;  %s553_s17 = scalar_lea.vmem %s798_s13, 128 }
  0x4c   : > { %v186_v23 = vadd.f32 %v185_v16, %v183_v18  ;;  %v224_v27 = vmul.f32 %v223_v25, %v767_v0  ;;  %v226_v28 = vstv %s401_s18  ;;  %s410_s8 = sld [smem:[#allocation3 + $0x183]]  ;;  %p554_p13 = scmp.ne.s32.totalorder %s798_s13, %s553_s17 }
  0x4d   : > { %v205_v30 = vadd.f32 %v204_v21, %v201_v24  ;;  %v227_v31 = vmul.f32 %v769_v1, %v226_v28  ;;  %v230_v32 = vstv %s402_s19  ;;  %s397_s9 = sld [smem:[#allocation4 + $0x1]]  ;;  %s557_s18 = sshll.u32 %s642_s21, 4  ;;  %s558_s18 = int_to_ptr.vmem [resolvable:$false] %s557_s18 }
  0x4e   : > { %v392_v29 = vmul.f32 -1.442695, %v186_v23  ;;  %v231_v33 = vmul.f32 %v771_v2, %v230_v32  ;;  %v234_v34 = vstv %s403_s24  ;;  %s404_s10 = sld [smem:[#allocation4 + $0x2]]  ;;  %p555_p3 = pnand %p554_p13, %p722_p0 }
  0x4f   : > { %v228_v35 = vadd.f32 %v227_v31, %v224_v27  ;;  %v235_v36 = vmul.f32 %v773_v4, %v234_v34  ;;  %s411_s11 = sld [smem:[#allocation4 + $0x3]]  ;;  %v209_v37 = vadd.f32 %v208_v26, %v205_v30  ;;  %v250_v38 = vstv %s407_s25  ;;  %s559_s19 = scalar_lea.vmem %s558_s18, 256 }
  0x50   : > { %489 = vpow2.f32 %v392_v29  ;;  %v253_v39 = vstv %s408_s27  ;;  %v251_v41 = vmul.f32 %v250_v38, %v767_v0  ;;  %p556_p5 = pneg %p555_p3  ;;  %p560_p6 = scmp.lt.s32.totalorder %s798_s13, %s558_s18 }
  0x51   : > { %v232_v40 = vadd.f32 %v231_v33, %v228_v35  ;;  %v254_v42 = vmul.f32 %v769_v1, %v253_v39  ;;  %v257_v43 = vstv %s409_s7  ;;  %p561_p8 = scmp.lt.s32.totalorder %s559_s19, %s553_s17 }
  0x52   : > { %v258_v44 = vmul.f32 %v771_v2, %v257_v43  ;;  %v261_v45 = vstv %s410_s8 }
  0x53   : > { %v236_v46 = vadd.f32 %v235_v36, %v232_v40  ;;  %v255_v47 = vadd.f32 %v254_v42, %v251_v41  ;;  %v262_v48 = vmul.f32 %v773_v4, %v261_v45  ;;  %v211_v49 = vstv %s397_s9  ;;  %p562_p10 = por %p561_p8, %p560_p6 }
  0x54   : > { %v212_v50 = vadd.f32 %v211_v49, %v209_v37  ;;  %v238_v51 = vstv %s404_s10 }
  0x55   : > { %v259_v52 = vadd.f32 %v258_v44, %v255_v47  ;;  %v239_v53 = vadd.f32 %v238_v51, %v236_v46  ;;  %v265_v55 = vstv %s411_s11  ;;  %p563_p11 = pnand %p562_p10, %p556_p5 }
  0x56   : > { %v398_v54 = vmul.f32 -1.442695, %v212_v50 }
  0x57   : > { %v263_v56 = vadd.f32 %v262_v48, %v259_v52  ;;  %v405_v57 = vmul.f32 -1.442695, %v239_v53 }
  0x58   : > { %491 = vpow2.f32 %v398_v54 }
  0x59   : > { %493 = vpow2.f32 %v405_v57  ;;  %v266_v58 = vadd.f32 %v265_v55, %v263_v56 }
  0x5b   : > { %v412_v59 = vmul.f32 -1.442695, %v266_v58 }
  0x5d   : > { %v490_v60 = vpop.eup %489  ;;  %495 = vpow2.f32 %v412_v59 }
  0x5e   : > { %v190_v61 = vadd.f32 1.0, %v490_v60 }
  0x60   : > { %497 = vrcp.f32 %v190_v61 }
  0x65   : > { %v492_v62 = vpop.eup %491 }
  0x66   : > { %v494_v63 = vpop.eup %493  ;;  %v216_v3 = vadd.f32 1.0, %v492_v62 }
  0x67   : > { %v243_v5 = vadd.f32 1.0, %v494_v63 }
  0x68   : > { %499 = vrcp.f32 %v216_v3 }
  0x69   : > { %501 = vrcp.f32 %v243_v5 }
  0x6a   : > { %v496_v6 = vpop.eup %495 }
  0x6b   : > { %v270_v7 = vadd.f32 1.0, %v496_v6 }
  0x6d   : > { %v498_v8 = vpop.eup %497  ;;  %503 = vrcp.f32 %v270_v7 }
  0x6e   : > { %v193_v9 = vmul.f32 %v498_v8, %v767_v0 }
  0x70   : > { %194 = vst [vmem:[%s161_s12] sm:$0x3] %v193_v9 }
  0x75   : > { %v500_v10 = vpop.eup %499 }
  0x76   : > { %v502_v11 = vpop.eup %501  ;;  %v219_v12 = vmul.f32 %v500_v10, %v769_v1 }
  0x77   : > { %v246_v13 = vmul.f32 %v502_v11, %v771_v2 }
  0x78   : > { %399 = vst [vmem:[%s161_s12 + $0x2] sm:$0x3] %v219_v12 }
  0x79   : > { %406 = vst [vmem:[%s161_s12 + $0x4] sm:$0x3] %v246_v13 }
  0x7a   : > { %v504_v14 = vpop.eup %503 }
  0x7b   : > { %v273_v0 = vmul.f32 %v504_v14, %v773_v4 }
  0x7d   : > { %413 = vst [vmem:[%s161_s12 + $0x6] sm:$0x3] %v273_v0 }
  0x7e   : > { %566 = shalt.err (!%p563_p11)
}
  0x7f   : > { %s567_s24 = scalar_lea.hbm %s803_s29, 128  ;;  %s571_s7 = scalar_lea.hbm %s854_s3, 256 }
  0x80   : > { %p568_p12 = scmp.ne.s32.totalorder %s803_s29, %s567_s24  ;;  %p572_p4 = scmp.lt.s32.totalorder %s803_s29, %s854_s3 }
  0x81   : > { %p573_p7 = scmp.lt.s32.totalorder %s571_s7, %s567_s24 }
  0x82   : > { %p569_p1 = pnand %p568_p12, %p722_p0 }
  0x83   : > { %p574_p13 = por %p573_p7, %p572_p4 }
  0x84   : > { %p570_p9 = pneg %p569_p1 }
  0x86   : > { %p575_p3 = pnand %p574_p13, %p570_p9 }
  0x88   : > { %578 = shalt.err (!%p575_p3)
}
  0x89   : > { %s643_s10 = smov 32   ;;  %s644_s11 = smov 2  }
  0x8a   : > { %423 = dma.vmem_to_hbm [thread:$0]  (%p722_p0), %s798_s13, 128, %s803_s29, %s277_s16, %s643_s10, %s643_s10, %s644_s11  }
  0x8b PF: > { %s306_s12 = sand.u32 1, %s615_s0   ;;  %p861_p5 = scmp.ge.s32.totalorder %s635_s23, 2 }
  0x8c   : > { %s307_s14 = scalar_lea.sflag [#allocation7], %s306_s12 }
  0x8d   : > { %p430_p6 = pnand %p861_p5, %p729_p2 }
  0x8f   : > { %p431_p8 = pneg %p430_p6 }
  0x91   : > { %610 = dma.done.wait (%p431_p8), %s307_s14, 128  }
  0x92   : > { %612 = vsyncadd (%p431_p8), %s307_s14, 4294967168  ;;  %s27_s23 = sadd.s32 1, %s635_s23   ;;  %s862_s0 = smov %s619_s1 }
  0x93   : > { %p24_p10 = scmp.ge.s32.totalorder %s27_s23, 4   ;;  %s863_s1 = smov %s623_s20 }
  0x94   : > { %s864_s20 = smov %s727_s5  ;;  %s865_s21 = smov %s631_s22 }
  0x95   : > { %s866_s22 = smov %s868_s26  ;;  %26 = sbr.rel (!%p24_p10) target bundleno = 22 (0x16), region = 75 }
  0x9a   :  { %312 = vsyncpa [#allocation6], 1 }
  0x9b   :  { %314 = vsyncpa [#allocation6 + $0x1], 1 }
  0x9c   :  { %315 = vsyncpa [#allocation7], 1 }
  0x9d   :  { %317 = vsyncpa [#allocation7 + $0x1], 1 }

</bundles_post_ra>
